<compile_context>
chip_gen: v5e
topology: v5e:2x2
jax: 0.10.0
libtpu: 0.0.40
codegen_flags: <defaults>
</compile_context>

<pallas_src>
import functools

import jax
import jax.numpy as jnp
from jax import lax
from jax.experimental import pallas as pl
from jax.experimental.pallas import tpu as pltpu


# ----------------------------------------------------------------------------
# Kernels
# ----------------------------------------------------------------------------
def _adain_kernel(x_ref, sig_ref, mu_ref, o_ref, *, ct):
    """Single-pass AdaIN: one (1, ct, HW) block carries the full spatial extent."""
    c_full = sig_ref.shape[1]
    if ct == c_full:
        sigma = sig_ref[...].astype(jnp.float32)            # (1, C, 1)
        mu = mu_ref[...].astype(jnp.float32)
    else:
        # sigma/mu blocks are full-C and resident per image; slice our channel window.
        start = pl.multiple_of(pl.program_id(1) * ct, ct)
        sigma = sig_ref[:, pl.ds(start, ct), :].astype(jnp.float32)   # (1, ct, 1)
        mu = mu_ref[:, pl.ds(start, ct), :].astype(jnp.float32)

    hw = x_ref.shape[-1]
    inv_hw = jnp.float32(1.0 / hw)
    inv_hwm1 = jnp.float32(1.0 / max(hw - 1, 1))             # torch.std ddof=1

    # Pass 1: per-channel mean (lane reduction). Re-read the ref each pass so no
    # full-block f32 copy has to live across passes as VMEM scratch.
    mean = jnp.sum(x_ref[...].astype(jnp.float32), axis=-1, keepdims=True) * inv_hw
    # Pass 2: exact two-pass unbiased variance, fused into the reduction.
    var = (
        jnp.sum(jnp.square(x_ref[...].astype(jnp.float32) - mean),
                axis=-1, keepdims=True)
        * inv_hwm1
    )
    # Hoist the divide: per-channel scale, then sub + FMA per element.
    scale = sigma * lax.rsqrt(var)                           # (1, ct, 1)
    o_ref[...] = ((x_ref[...].astype(jnp.float32) - mean) * scale + mu).astype(o_ref.dtype)


def _adain_stats_kernel(x_ref, mean_ref, rstd_ref, *, hw_total):
    """Phase 1 of the HW-tiled path: per-channel mean and 1/std reduced over HW chunks.

    mean_ref / rstd_ref are resident across the reduction axis and are used as the
    f32 sum / sum-of-squares accumulators until the final step.
    """
    k = pl.program_id(2)

    @pl.when(k == 0)
    def _():
        mean_ref[...] = jnp.zeros_like(mean_ref)
        rstd_ref[...] = jnp.zeros_like(rstd_ref)

    mean_ref[...] += jnp.sum(x_ref[...].astype(jnp.float32), axis=-1, keepdims=True)
    rstd_ref[...] += jnp.sum(jnp.square(x_ref[...].astype(jnp.float32)),
                             axis=-1, keepdims=True)

    @pl.when(k == pl.num_programs(2) - 1)
    def _():
        inv_hw = jnp.float32(1.0 / hw_total)
        inv_hwm1 = jnp.float32(1.0 / max(hw_total - 1, 1))
        mean = mean_ref[...] * inv_hw
        # sum-of-squares form; clamp tiny negative from f32 cancellation so a
        # constant channel still yields var=0 -> inf/NaN exactly like the reference.
        var = jnp.maximum(
            (rstd_ref[...] - jnp.float32(hw_total) * mean * mean) * inv_hwm1,
            jnp.float32(0.0))
        mean_ref[...] = mean
        rstd_ref[...] = lax.rsqrt(var)


def _adain_apply_kernel(x_ref, mean_ref, scale_ref, mu_ref, o_ref):
    """Phase 2 of the HW-tiled path: out = (x - mean) * (sigma/std) + mu."""
    o_ref[...] = ((x_ref[...].astype(jnp.float32) - mean_ref[...]) * scale_ref[...]
                  + mu_ref[...]).astype(o_ref.dtype)


# ----------------------------------------------------------------------------
# Tiling / VMEM policy
# ----------------------------------------------------------------------------
def _vmem_capacity_bytes():
    try:
        cap = getattr(pltpu.get_tpu_info(), "vmem_capacity_bytes", None)
        if cap:
            return int(cap)
    except Exception:
        pass
    return 64 * 2**20  # conservative default (v7x-sized VMEM)


def _vmem_limit_bytes(block_data_bytes, cap):
    """Explicit scoped-VMEM limit: double-buffered in+out blocks + headroom."""
    want = block_data_bytes + 8 * 2**20
    return int(min(max(want, 32 * 2**20), int(cap * 0.9)))


def _pick_tiles(c, hw, itemsize, budget):
    """Return (c_tile, hw_tile). hw_tile == hw -> single-pass kernel."""
    sub = max(8, 32 // itemsize)          # sublane pack: 8 f32, 16 bf16, 32 int8
    if c % sub == 0:
        c_candidates = [k for k in range(sub, c + 1, sub) if c % k == 0]
    else:
        c_candidates = [c]                # block must equal full dim when unaligned

    # Preferred: full HW per block (single-pass), largest channel tile that fits.
    for ct in reversed(c_candidates):
        if ct * hw * itemsize <= budget:
            return ct, hw

    # Even the minimum channel tile exceeds the budget -> tile HW (two-phase path).
    if hw % 128 == 0:
        ct = c_candidates[0]
        max_lanes = max(128, budget // max(1, ct * itemsize))
        hwt = (max_lanes // 128) * 128
        while hw % hwt != 0:
            hwt -= 128
        return ct, max(hwt, 128)

    # Last resort: full HW with the smallest channel tile; the caller raises
    # vmem_limit_bytes accordingly.  (Lane-misaligned huge HW cannot be tiled.)
    return c_candidates[0], hw


# ----------------------------------------------------------------------------
# Wrapper
# ----------------------------------------------------------------------------
def _adain_single_pass(x_flat, sigma, mu, ct, cap):
    n, c, hw = x_flat.shape
    block_bytes = ct * hw * x_flat.dtype.itemsize
    out_block_bytes = ct * hw * x_flat.dtype.itemsize
    vmem_limit = _vmem_limit_bytes(2 * block_bytes + 2 * out_block_bytes, cap)

    return pl.pallas_call(
        functools.partial(_adain_kernel, ct=ct),
        out_shape=jax.ShapeDtypeStruct((n, c, hw), x_flat.dtype),
        grid_spec=pltpu.PrefetchScalarGridSpec(
            num_scalar_prefetch=0,
            grid=(n, c // ct),
            in_specs=[
                pl.BlockSpec((1, ct, hw), lambda i, j: (i, j, 0)),
                pl.BlockSpec((1, c, 1), lambda i, j: (i, 0, 0)),   # sigma: per-image resident
                pl.BlockSpec((1, c, 1), lambda i, j: (i, 0, 0)),   # mu:    per-image resident
            ],
            out_specs=pl.BlockSpec((1, ct, hw), lambda i, j: (i, j, 0)),
        ),
        compiler_params=pltpu.CompilerParams(
            dimension_semantics=("parallel", "parallel"),
            vmem_limit_bytes=vmem_limit,
        ),
    )(x_flat, sigma, mu)


def _adain_two_phase(x_flat, sigma, mu, ct, hwt, cap):
    n, c, hw = x_flat.shape
    block_bytes = ct * hwt * x_flat.dtype.itemsize
    vmem_limit = _vmem_limit_bytes(4 * block_bytes, cap)
    grid = (n, c // ct, hw // hwt)

    mean, rstd = pl.pallas_call(
        functools.partial(_adain_stats_kernel, hw_total=hw),
        out_shape=(jax.ShapeDtypeStruct((n, c, 1), jnp.float32),
                   jax.ShapeDtypeStruct((n, c, 1), jnp.float32)),
        grid_spec=pltpu.PrefetchScalarGridSpec(
            num_scalar_prefetch=0,
            grid=grid,
            in_specs=[pl.BlockSpec((1, ct, hwt), lambda i, j, k: (i, j, k))],
            out_specs=[pl.BlockSpec((1, ct, 1), lambda i, j, k: (i, j, 0)),
                       pl.BlockSpec((1, ct, 1), lambda i, j, k: (i, j, 0))],
        ),
        compiler_params=pltpu.CompilerParams(
            dimension_semantics=("parallel", "parallel", "arbitrary"),
            vmem_limit_bytes=vmem_limit,
        ),
    )(x_flat)

    # Tiny per-channel combine in XLA (free): scale = sigma / std.
    scale = sigma * rstd

    return pl.pallas_call(
        _adain_apply_kernel,
        out_shape=jax.ShapeDtypeStruct((n, c, hw), x_flat.dtype),
        grid_spec=pltpu.PrefetchScalarGridSpec(
            num_scalar_prefetch=0,
            grid=grid,
            in_specs=[
                pl.BlockSpec((1, ct, hwt), lambda i, j, k: (i, j, k)),
                pl.BlockSpec((1, ct, 1), lambda i, j, k: (i, j, 0)),
                pl.BlockSpec((1, ct, 1), lambda i, j, k: (i, j, 0)),
                pl.BlockSpec((1, ct, 1), lambda i, j, k: (i, j, 0)),
            ],
            out_specs=pl.BlockSpec((1, ct, hwt), lambda i, j, k: (i, j, k)),
        ),
        compiler_params=pltpu.CompilerParams(
            dimension_semantics=("parallel", "parallel", "parallel"),
            vmem_limit_bytes=vmem_limit,
        ),
    )(x_flat, mean, scale, mu)


def adain(x, y, *, c_tile=None, hw_tile=None):
    """AdaIN forward. x: (N, C, H, W), y: (N, 2C). Returns (N, C, H, W) in x.dtype."""
    n, c, h, w = x.shape
    assert y.shape == (n, 2 * c), f"y must be (N, 2C); got {y.shape}"
    hw = h * w
    assert hw >= 2, "torch.std with ddof=1 needs >= 2 spatial elements (else NaN)"

    x_flat = x.reshape(n, c, hw)
    # Pre-split sigma/mu in XLA (free); stats & affine math run in f32.
    sigma = y[:, :c].reshape(n, c, 1).astype(jnp.float32)
    mu = y[:, c:].reshape(n, c, 1).astype(jnp.float32)

    itemsize = x_flat.dtype.itemsize
    cap = _vmem_capacity_bytes()
    budget = 2 * 2**20 if cap <= 64 * 2**20 else 4 * 2**20   # per x-buffer budget

    ct_auto, hwt_auto = _pick_tiles(c, hw, itemsize, budget)
    ct = c_tile if c_tile is not None else ct_auto
    hwt = hw_tile if hw_tile is not None else hwt_auto
    assert c % ct == 0, f"c_tile={ct} must divide C={c}"
    assert hw % hwt == 0 and (hwt == hw or hwt % 128 == 0), \
        f"hw_tile={hwt} must divide HW={hw} and be 128-aligned (or equal HW)"

    if hwt == hw:
        out_flat = _adain_single_pass(x_flat, sigma, mu, ct, cap)
    else:
        out_flat = _adain_two_phase(x_flat, sigma, mu, ct, hwt, cap)
    return out_flat.reshape(n, c, h, w)


# ----------------------------------------------------------------------------
# Reference + self-test
# ----------------------------------------------------------------------------
def _adain_ref(x, y):
    """Pure-JAX reference mirroring the PyTorch forward."""
    c = y.shape[1] // 2
    sigma = y[:, :c][:, :, None, None]
    mu = y[:, c:][:, :, None, None]
    x_mu = jnp.mean(x, axis=(2, 3), keepdims=True)
    x_sigma = jnp.std(x, axis=(2, 3), keepdims=True, ddof=1)
    return sigma * ((x - x_mu) / x_sigma) + mu


if __name__ == "__main__":
    key = jax.random.PRNGKey(0)
    k1, k2, k3, k4, k5, k6 = jax.random.split(key, 6)

    # Case 1: module-spec shape (C=4 not sublane-aligned -> full-C block, single-pass).
    N, C, H, W = 2, 4, 16, 16
    x = jax.random.normal(k1, (N, C, H, W), dtype=jnp.float32)
    y = jax.random.normal(k2, (N, 2 * C), dtype=jnp.float32)
    out = adain(x, y)
    jax.block_until_ready(out)
    ref = _adain_ref(x, y)
    assert out.shape == (N, C, H, W)
    assert jnp.allclose(out, ref, atol=1e-5, rtol=1e-5), "mismatch vs reference (case 1)"

    # Case 2: channel-tiled grid with per-image-resident sigma/mu (in-kernel pl.ds window).
    N2, C2, H2, W2 = 2, 32, 16, 16
    x2 = jax.random.normal(k3, (N2, C2, H2, W2), dtype=jnp.float32)
    y2 = jax.random.normal(k4, (N2, 2 * C2), dtype=jnp.float32)
    out2 = adain(x2, y2, c_tile=8)
    jax.block_until_ready(out2)
    ref2 = _adain_ref(x2, y2)
    assert jnp.allclose(out2, ref2, atol=1e-5, rtol=1e-5), "mismatch vs reference (case 2)"

    # Case 3: force the HW-tiled two-phase path (large-image fallback) at a small shape.
    N3, C3, H3, W3 = 1, 16, 16, 32
    x3 = jax.random.normal(k5, (N3, C3, H3, W3), dtype=jnp.float32)
    y3 = jax.random.normal(k6, (N3, 2 * C3), dtype=jnp.float32)
    out3 = adain(x3, y3, c_tile=8, hw_tile=128)
    jax.block_until_ready(out3)
    ref3 = _adain_ref(x3, y3)
    assert jnp.allclose(out3, ref3, atol=1e-4, rtol=1e-4), "mismatch vs reference (case 3)"

    print("KERNEL_OK")
</pallas_src>

<mosaic_0001>
module attributes {stable_mosaic.version = 11 : i64} {
  func.func @_adain_kernel(%arg0: i32, %arg1: i32, %arg2: memref<1x4x256xf32, #tpu.memory_space<vmem>>, %arg3: memref<1x4x1xf32, #tpu.memory_space<vmem>>, %arg4: memref<1x4x1xf32, #tpu.memory_space<vmem>>, %arg5: memref<1x4x256xf32, #tpu.memory_space<vmem>>) attributes {dimension_semantics = [#tpu.dimension_semantics<parallel>, #tpu.dimension_semantics<parallel>], iteration_bounds = array<i64: 2, 1>, scalar_prefetch = 0 : i64, scratch_operands = 0 : i64, tpu.core_type = #tpu.core_type<tc>, window_params = [{transform_indices = @transform_0, window_bounds = array<i64: 1, 4, 256>}, {transform_indices = @transform_1, window_bounds = array<i64: 1, 4, 1>}, {transform_indices = @transform_2, window_bounds = array<i64: 1, 4, 1>}, {transform_indices = @transform_3, window_bounds = array<i64: 1, 4, 256>}]} {
    %c0 = arith.constant 0 : index
    %c0_0 = arith.constant 0 : index
    %c0_1 = arith.constant 0 : index
    %0 = vector.load %arg3[%c0, %c0_0, %c0_1] : memref<1x4x1xf32, #tpu.memory_space<vmem>>, vector<1x4x1xf32>
    %c0_2 = arith.constant 0 : index
    %c0_3 = arith.constant 0 : index
    %c0_4 = arith.constant 0 : index
    %1 = vector.load %arg4[%c0_2, %c0_3, %c0_4] : memref<1x4x1xf32, #tpu.memory_space<vmem>>, vector<1x4x1xf32>
    %c0_5 = arith.constant 0 : index
    %c0_6 = arith.constant 0 : index
    %c0_7 = arith.constant 0 : index
    %2 = vector.load %arg2[%c0_5, %c0_6, %c0_7] : memref<1x4x256xf32, #tpu.memory_space<vmem>>, vector<1x4x256xf32>
    %cst = arith.constant dense<0.000000e+00> : vector<1x4xf32>
    %3 = vector.multi_reduction <add>, %2, %cst [2] : vector<1x4x256xf32> to vector<1x4xf32>
    %4 = vector.shape_cast %3 : vector<1x4xf32> to vector<1x4x1xf32>
    %cst_8 = arith.constant 3.906250e-03 : f32
    %5 = vector.broadcast %cst_8 : f32 to vector<1x4x1xf32>
    %6 = arith.mulf %4, %5 : vector<1x4x1xf32>
    %c0_9 = arith.constant 0 : index
    %c0_10 = arith.constant 0 : index
    %c0_11 = arith.constant 0 : index
    %7 = vector.load %arg2[%c0_9, %c0_10, %c0_11] : memref<1x4x256xf32, #tpu.memory_space<vmem>>, vector<1x4x256xf32>
    %8 = vector.broadcast %6 : vector<1x4x1xf32> to vector<1x4x256xf32>
    %9 = arith.subf %7, %8 : vector<1x4x256xf32>
    %10 = arith.mulf %9, %9 : vector<1x4x256xf32>
    %cst_12 = arith.constant dense<0.000000e+00> : vector<1x4xf32>
    %11 = vector.multi_reduction <add>, %10, %cst_12 [2] : vector<1x4x256xf32> to vector<1x4xf32>
    %12 = vector.shape_cast %11 : vector<1x4xf32> to vector<1x4x1xf32>
    %cst_13 = arith.constant 0.00392156886 : f32
    %13 = vector.broadcast %cst_13 : f32 to vector<1x4x1xf32>
    %14 = arith.mulf %12, %13 : vector<1x4x1xf32>
    %15 = math.rsqrt %14 : vector<1x4x1xf32>
    %16 = arith.mulf %0, %15 : vector<1x4x1xf32>
    %c0_14 = arith.constant 0 : index
    %c0_15 = arith.constant 0 : index
    %c0_16 = arith.constant 0 : index
    %17 = vector.load %arg2[%c0_14, %c0_15, %c0_16] : memref<1x4x256xf32, #tpu.memory_space<vmem>>, vector<1x4x256xf32>
    %18 = vector.broadcast %6 : vector<1x4x1xf32> to vector<1x4x256xf32>
    %19 = arith.subf %17, %18 : vector<1x4x256xf32>
    %20 = vector.broadcast %16 : vector<1x4x1xf32> to vector<1x4x256xf32>
    %21 = arith.mulf %19, %20 : vector<1x4x256xf32>
    %22 = vector.broadcast %1 : vector<1x4x1xf32> to vector<1x4x256xf32>
    %23 = arith.addf %21, %22 : vector<1x4x256xf32>
    %c0_17 = arith.constant 0 : index
    %c0_18 = arith.constant 0 : index
    %c0_19 = arith.constant 0 : index
    %24 = vector.load %arg5[%c0_17, %c0_18, %c0_19] : memref<1x4x256xf32, #tpu.memory_space<vmem>>, vector<1x4x256xf32>
    tpu.vector_store %arg5[%c0_17, %c0_18, %c0_19], %23 {strides = array<i32>} : memref<1x4x256xf32, #tpu.memory_space<vmem>>, vector<1x4x256xf32>,
    return
  }
  func.func @transform_0(%arg0: i32, %arg1: i32) -> (i32, i32, i32) {
    %c0_i32 = arith.constant 0 : i32
    %c0_i32_0 = arith.constant 0 : i32
    return %arg0, %arg1, %c0_i32 : i32, i32, i32
  }
  func.func @transform_1(%arg0: i32, %arg1: i32) -> (i32, i32, i32) {
    %c0_i32 = arith.constant 0 : i32
    %c0_i32_0 = arith.constant 0 : i32
    %c0_i32_1 = arith.constant 0 : i32
    return %arg0, %c0_i32, %c0_i32_0 : i32, i32, i32
  }
  func.func @transform_2(%arg0: i32, %arg1: i32) -> (i32, i32, i32) {
    %c0_i32 = arith.constant 0 : i32
    %c0_i32_0 = arith.constant 0 : i32
    %c0_i32_1 = arith.constant 0 : i32
    return %arg0, %c0_i32, %c0_i32_0 : i32, i32, i32
  }
  func.func @transform_3(%arg0: i32, %arg1: i32) -> (i32, i32, i32) {
    %c0_i32 = arith.constant 0 : i32
    %c0_i32_0 = arith.constant 0 : i32
    return %arg0, %arg1, %c0_i32 : i32, i32, i32
  }
}

</mosaic_0001>

<bundles_post_ra>
// kernel: tpu_custom_call.1
= control target key start
LH: loop header
LB: loop body
LE: loop exit
PB: predicated region body
PF: predicated region fallthrough
CT: control target
= control target key end

     0   :  { %8 = vsyncpa [#allocation3], 0  ;;  %s712_s0 = inlined_call_operand.vmem [shape: f32[2,4,256], index: 0, kind: input, shape index: {}]   ;;  %s713_s1 = inlined_call_operand.vmem [shape: f32[2,4,1], index: 1, kind: input, shape index: {}]   ;;  %s714_s2 = inlined_call_operand.vmem [shape: f32[2,4,1], index: 2, kind: input, shape index: {}]   ;;  %s715_s3 = inlined_call_operand.hbm [shape: f32[2,4,256], index: 3, kind: output, shape index: {}]  }
   0x1   :  { %10 = vsyncpa [#allocation3 + $0x1], 0  ;;  %s601_s12 = smov 0   ;;  %s603_s13 = smov 0  }
   0x2   :  { %s605_s14 = smov 0   ;;  %s607_s15 = smov 0  }
   0x3   :  { %s609_s16 = smov 0   ;;  %s611_s17 = smov 0  }
   0x4 LB: > { %s421_s18 = sadd.s32 4294967295, %s577_s17   ;;  %s422_s19 = sadd.s32 4294967294, %s577_s17   ;;  %s577_s17 = sphi %s611_s17, %s16_s17   ;;  %s573_s16 = sphi %s609_s16, %s722_s16   ;;  %s569_s15 = sphi %s607_s15, %s721_s15   ;;  %s565_s14 = sphi %s605_s14, %s720_s14   ;;  %s561_s13 = sphi %s603_s13, %s719_s13   ;;  %s557_s12 = sphi %s601_s12, %s718_s12  }
   0x5   : > { %s28_s20 = sadd.s32 1, %s573_s16  ;;  %s117_s21 = sadd.s32 1, %s565_s14 }
   0x6   : > { %p30_p0 = scmp.ge.s32.totalorder %s28_s20, 2  ;;  %p127_p1 = scmp.ne.s32.totalorder %s565_s14, %s561_s13 }
   0x7   : > { %p128_p2 = scmp.eq.s32.totalorder %s421_s18, 1  ;;  %p133_p3 = scmp.ne.s32.totalorder %s561_s13, %s557_s12 }
   0x8   : > { %s724_s20 = smov (%p30_p0, %s28_s20), 0  ;;  %p134_p5 = scmp.eq.s32.totalorder %s422_s19, 1 }
   0x9   : > { %p641_p4 = por %p128_p2, %p127_p1  ;;  %s112_s23 = ssub.s32 %s573_s16, %s724_s20 }
   0xa   : > { %p425_p6 = scmp.ge.s32.totalorder %s577_s17, 1  ;;  %p115_p7 = scmp.eq.s32.totalorder %s112_s23, 0 }
   0xb   : > { %p648_p8 = por %p134_p5, %p133_p3  ;;  %p178_p9 = scmp.lt.s32.totalorder %s577_s17, 3 }
   0xc   : > { %s654_s25 = scalar_select %p115_p7, %s565_s14, %s117_s21  }
   0xd   : > { %p179_p10 = pnand %p425_p6, %p178_p9 }
   0xe   : > { %p214_p11 = scmp.lt.s32.totalorder (!%p179_p10), %s569_s15, 1  ;;  %s211_s11 = sand.u32 (!%p179_p10), 1, %s561_s13  }
   0xf   : > { %182 = sbr.rel (%p179_p10) target bundleno = 439 (0x1b7), region = 32  ;;  %s426_s18 = sshll.u32 (!%p179_p10), %s211_s11, 3 }
  0x10   : > { %s437_s19 = sshll.u32 (!%p179_p10), %s569_s15, 3 }
  0x14   : > { %s658_s26 = scalar_select %p214_p11, %s569_s15, 1  ;;  %vm240_vm0 = vcmask 1043456   ;;  %v579_v6 = vmov 839922192   ;;  %v580_v19 = vmov 0  }
  0x15   : > { %v249_v7 = vunpack.c.l.s4 %v579_v6  ;;  %495 = vset.pattern.permute.xlu1 %v580_v19  ;;  %496 = vset.pattern.permute.xlu0 %v580_v19 }
  0x16   : > { %s436_s27 = sshll.u32 %s658_s26, 3  ;;  %s429_s4 = sshll.u32 %s658_s26, 2 }
  0x17   : > { %s222_s30 = scalar_lea.vmem %s712_s0, %s436_s27  ;;  %v250_v8 = vunpack.c.0.s8 %v249_v7  ;;  %s226_s7 = scalar_lea.vmem %s713_s1, %s429_s4 }
  0x18   : > { %v233_v0 = vld [vmem:[%s222_s30] sm:$0xff]  ;;  %s230_s10 = scalar_lea.vmem %s714_s2, %s429_s4  ;;  %s313_s26 = scalar_lea.hbm %s715_s3, %s437_s19 }
  0x19   : > { %235 = vst [vmem:[#allocation1] ss:$2 sm:$0xff] %v233_v0  ;;  %v231_v27 = vld [vmem:[%s226_s7] sm:$0xf]  ;;  %s213_s27 = scalar_lea.vmem [#allocation2], %s426_s18  ;;  %s317_s29 = sshll.u32 %s313_s26, 4  ;;  %s318_s29 = int_to_ptr.hbm [resolvable:$true] %s317_s29 }
  0x1a   : > { %v232_v31 = vld [vmem:[%s230_s10] sm:$0xf]  ;;  %s315_s28 = sshll.u32 %s213_s27, 4  ;;  %s300_s30 = scalar_lea.sflag [#allocation3], %s211_s11  ;;  %s316_s28 = int_to_ptr.vmem [resolvable:$true] %s315_s28 }
  0x1b   : > { %s513_s4 = sshra.s32 %s318_s29, 4  ;;  %s519_s7 = scalar_lea.hbm %s715_s3, 16  ;;  %s514_s4 = int_to_ptr.hbm [resolvable:$true] %s513_s4 }
  0x1c   : > { %s515_s15 = scalar_lea.hbm %s514_s4, 8  ;;  %p520_p1 = scmp.lt.s32.totalorder %s514_s4, %s715_s3 }
  0x1d   : > { %p516_p12 = scmp.ne.s32.totalorder %s514_s4, %s515_s15  ;;  %p521_p2 = scmp.lt.s32.totalorder %s519_s7, %s515_s15 }
  0x1f   : > { %p517_p13 = pnand %p516_p12, %p641_p4  ;;  %p522_p3 = por %p521_p2, %p520_p1 }
  0x20   : > { %v236_v1 = vld.sshfl [vmem:[#allocation1] sm:$0xff pattern:$0x75316420]  ;;  %v237_v2 = vld.sshfl [vmem:[#allocation1 + $0x8] sm:$0xff pattern:$0x75316420] }
  0x21   : > { %v241_v3 = vsel %vm240_vm0, %v236_v1, 0.0  ;;  %v242_v4 = vsel %vm240_vm0, %v237_v2, 0.0  ;;  %p518_p0 = pneg %p517_p13 }
  0x22   : > { %v243_v5 = vadd.f32 %v242_v4, %v241_v3 }
  0x23   : > { %p523_p5 = pnand %p522_p3, %p518_p0 }
  0x24   : > { %244 = vadd.xlane.f32.xlu0 %v243_v5 }
  0x97   : > { %v245_v9 = vpop.xlane.xlu0 %244 }
  0x98   : > { %v246_v10 = vmul.f32 0.00390625, %v245_v9 }
  0x9a   : > { %v251_v11 = vperm.slane %v246_v10, %v250_v8 }
  0x9c   : > { %v253_v12 = vsub.f32 %v233_v0, %v251_v11 }
  0x9e   : > { %v254_v13 = vmul.f32 %v253_v12, %v253_v12 }
  0xa0   : > { %256 = vst [vmem:[#allocation1] ss:$2 sm:$0xff] %v254_v13 }
  0xa7   : > { %v257_v14 = vld.sshfl [vmem:[#allocation1] sm:$0xff pattern:$0x75316420]  ;;  %v258_v15 = vld.sshfl [vmem:[#allocation1 + $0x8] sm:$0xff pattern:$0x75316420] }
  0xa8   : > { %v261_v16 = vsel %vm240_vm0, %v257_v14, 0.0  ;;  %v262_v17 = vsel %vm240_vm0, %v258_v15, 0.0 }
  0xa9   : > { %v263_v18 = vadd.f32 %v262_v17, %v261_v16 }
  0xab   : > { %264 = vadd.xlane.f32.xlu0 %v263_v18 }
 0x11e   : > { %v265_v20 = vpop.xlane.xlu0 %264 }
 0x11f   : > { %v266_v21 = vmul.f32 0.003921569, %v265_v20 }
 0x121   : > { %497 = vrsqrt.f32 %v266_v21  ;;  %vm273_vm2 = vweird.f32 %v266_v21 }
 0x127   : > { %v498_v22 = vpop.eup %497 }
 0x128   : > { %v268_v23 = vmul.f32 %v498_v22, %v266_v21  ;;  %vm274_vm1 = vweird.f32 %v498_v22 }
 0x129   : > { %vm275_vm3 = vmor %vm273_vm2, %vm274_vm1 }
 0x12a   : > { %v269_v24 = vmul.f32 %v498_v22, %v268_v23 }
 0x12c   : > { %v270_v25 = vmul.f32 0.5, %v269_v24 }
 0x12e   : > { %v271_v26 = vsub.f32 1.5, %v270_v25 }
 0x130   : > { %v272_v28 = vmul.f32 %v498_v22, %v271_v26 }
 0x132   : > { %v276_v29 = vsel %vm275_vm3, %v498_v22, %v272_v28 }
 0x133   : > { %v277_v30 = vmul.f32 %v276_v29, %v231_v27 }
 0x135   : > { %280 = vperm.xlu1 %495, %v277_v30  }
 0x13d   : > { %290 = vperm.xlu1 %495, %v232_v31  }
 0x1a7   : > { %v281_v32 = vpop.permute.xlu1 %280 }
 0x1a8   : > { %v285_v33 = vperm.slane %v281_v32, %v250_v8 }
 0x1aa   : > { %v287_v35 = vmul.f32 %v285_v33, %v253_v12 }
 0x1af   : > { %v291_v34 = vpop.permute.xlu1 %290 }
 0x1b0   : > { %v295_v36 = vperm.slane %v291_v34, %v250_v8 }
 0x1b2   : > { %v297_v37 = vadd.f32 %v295_v36, %v287_v35 }
 0x1b4   : > { %298 = vst [vmem:[%s213_s27] sm:$0xff] %v297_v37 }
 0x1b5   : > { %526 = shalt.err (!%p523_p5)
}
 0x1b6   : > { %438 = dma.vmem_to_hbm [thread:$0]  (%p641_p4), %s316_s28, 128, %s318_s29, %s300_s30  }
 0x1b7 PF: > { %p444_p6 = scmp.ge.s32.totalorder %s577_s17, 2  ;;  %s329_s10 = sand.u32 1, %s557_s12  }
 0x1b8   : > { %s330_s11 = scalar_lea.sflag [#allocation3], %s329_s10 }
 0x1b9   : > { %p441_p7 = pnand %p444_p6, %p648_p8 }
 0x1bb   : > { %p442_p9 = pneg %p441_p7 }
 0x1bd   : > { %552 = dma.done.wait (%p442_p9), %s330_s11, 128  }
 0x1be   : > { %554 = vsyncadd (%p442_p9), %s330_s11, 4294967168  ;;  %s16_s17 = sadd.s32 1, %s577_s17   ;;  %s718_s12 = smov %s561_s13 }
 0x1bf   : > { %p13_p10 = scmp.ge.s32.totalorder %s16_s17, 4   ;;  %s719_s13 = smov %s565_s14 }
 0x1c0   : > { %s720_s14 = smov %s654_s25  ;;  %s721_s15 = smov %s573_s16 }
 0x1c1   : > { %s722_s16 = smov %s724_s20  ;;  %15 = sbr.rel (!%p13_p10) target bundleno = 4 (0x4), region = 73 }
 0x1c6   :  { %336 = vsyncpa [#allocation3], 1 }
 0x1c7   :  { %338 = vsyncpa [#allocation3 + $0x1], 1 }

</bundles_post_ra>
